<compile_context>
chip_gen: v5e
topology: v5e:2x2
jax: 0.10.0
libtpu: 0.0.40
codegen_flags: <defaults>
</compile_context>

<pallas_src>
import functools
import math

import jax
import jax.numpy as jnp
import numpy as np
from jax.experimental import pallas as pl
from jax.experimental.pallas import tpu as pltpu


def _round_up(x: int, m: int) -> int:
    return ((x + m - 1) // m) * m


def _adaptive_pool_matrix(in_size: int, out_size: int) -> np.ndarray:
    """Matrix M (out, in) s.t. M @ v == nn.AdaptiveAvgPool1d(out)(v)."""
    m = np.zeros((out_size, in_size), np.float32)
    for i in range(out_size):
        start = (i * in_size) // out_size
        end = -(-((i + 1) * in_size) // out_size)  # ceil
        m[i, start:end] = 1.0 / (end - start)
    return m


def _mlca_kernel(x_ref, wpoolT_ref, wupT_ref, wl_ref, wg_ref, o_ref, *,
                 bt: int, c: int, local_weight: float):
    R, MN = x_ref.shape                      # R = bt * c (batch folded into M)
    L2 = wupT_ref.shape[0]
    k = wl_ref.shape[0]
    pad = (k - 1) // 2
    lw = local_weight
    cdt = wpoolT_ref.dtype                   # matmul operand dtype (f32 or bf16)

    x_all = x_ref[...]                                            # (R, MN)
    xm = x_all if x_all.dtype == cdt else x_all.astype(cdt)

    # --- adaptive avg pool (m,n)->(L,L): ONE MXU matmul for the whole block ---
    lb = jnp.dot(xm, wpoolT_ref[...],
                 preferred_element_type=jnp.float32)              # (R, L2) f32
    lb3 = lb.reshape(bt, c, L2)              # free view: c is a multiple of 8

    # --- local branch: Conv1d('same') over the flat sequence of length L2*c,
    # ordered position-major / channel-minor.  A flat shift by d (|d|<=pad<=c)
    # is a static channel slice of [prev-position ; current ; next-position].
    zcol = jnp.zeros((bt, c, 1), jnp.float32)
    prev = jnp.concatenate([zcol, lb3[:, :, :L2 - 1]], axis=2)    # pos p-1
    nxt = jnp.concatenate([lb3[:, :, 1:], zcol], axis=2)          # pos p+1
    ext = jnp.concatenate([prev, lb3, nxt], axis=1)               # (bt, 3c, L2)
    y_l = wl_ref[pad] * lb3                  # centre tap folded into the init
    for j in range(k):
        if j == pad:
            continue
        off = c + (j - pad)
        y_l = y_l + wl_ref[j] * ext[:, off:off + c, :]

    # --- global branch: 1x1 pool of the local map, then Conv1d('same') over
    # the channel sequence (sublane axis).
    g = jnp.mean(lb3, axis=2, keepdims=True)                      # (bt, c, 1)
    y_g = wg_ref[pad] * g
    if pad > 0:
        zp = jnp.zeros((bt, pad, 1), jnp.float32)
        gpad = jnp.concatenate([zp, g, zp], axis=1)               # (bt, c+2p, 1)
        for j in range(k):
            if j == pad:
                continue
            y_g = y_g + wg_ref[j] * gpad[:, j:j + c, :]

    att_mix = (jax.nn.sigmoid(y_g) * (1.0 - lw)
               + jax.nn.sigmoid(y_l) * lw)                        # (bt, c, L2)
    att_mix = att_mix.reshape(R, L2).astype(cdt)

    # --- adaptive upsample (L,L)->(m,n): ONE lane-dense MXU matmul ---
    att_all = jnp.dot(att_mix, wupT_ref[...],
                      preferred_element_type=jnp.float32)         # (R, MN) f32
    o_ref[...] = (x_all.astype(jnp.float32) * att_all).astype(o_ref.dtype)


@functools.partial(jax.jit, static_argnames=("local_size", "local_weight"))
def mlca_pallas(x_nchw, w_local, w_global, *, local_size=5, local_weight=0.5):
    b, c, m, n = x_nchw.shape
    L = local_size
    L2 = L * L
    mn = m * n
    k = int(w_local.shape[0])
    pad = (k - 1) // 2
    assert pad <= c, "flat-shift trick requires (k-1)//2 <= channels"
    assert c % 8 == 0, "channel count must be a multiple of 8 (sublane tiling)"

    itemsize = jnp.dtype(x_nchw.dtype).itemsize
    compute_dtype = jnp.bfloat16 if x_nchw.dtype == jnp.bfloat16 else jnp.float32
    csize = jnp.dtype(compute_dtype).itemsize

    # NCHW -> (b*c, m*n): pure reshape, no HBM transpose.
    x2 = x_nchw.reshape(b * c, mn)

    # Pool / upsample matrices (compile-time constants under jit), oriented for
    # lane-dense matmuls inside the kernel.
    pr = _adaptive_pool_matrix(m, L)
    pc = _adaptive_pool_matrix(n, L)
    w_poolT = jnp.asarray(np.kron(pr, pc).T, compute_dtype)       # (mn, L2)
    ur = _adaptive_pool_matrix(L, m)
    uc = _adaptive_pool_matrix(L, n)
    w_upT = jnp.asarray(np.kron(ur, uc).T, compute_dtype)         # (L2, mn)

    # ---- batch tiling: large blocks (kernel is HBM-bound), masked tail via
    # cdiv (no divisor collapse), even step count preferred for v7x's two TCs
    # but never at the cost of shrinking blocks below ~2 MiB.
    per_batch = c * mn * itemsize
    target_block_bytes = 4 << 20
    bt = max(1, min(b, target_block_bytes // max(1, per_batch)))
    steps = pl.cdiv(b, bt)
    if steps > 1 and steps % 2:
        for cand in range(bt - 1, 0, -1):
            if pl.cdiv(b, cand) % 2 == 0 and cand * per_batch >= (2 << 20):
                bt = cand
                break
    steps = pl.cdiv(b, bt)

    # VMEM budget: double-buffered in/out blocks + lane-padded weight buffers
    # + in-kernel f32 temporaries, with slack; capped well under v7x's 64 MiB.
    blk_bytes = bt * c * mn * itemsize
    wpool_bytes = mn * _round_up(L2, 128) * csize
    wup_bytes = _round_up(L2, 8) * mn * csize
    temp_bytes = bt * c * (3 * mn * 4 + 10 * _round_up(L2, 128) * 4)
    vmem_limit = int(min(56 << 20,
                         4 * blk_bytes + 2 * (wpool_bytes + wup_bytes)
                         + temp_bytes + (4 << 20)))

    kernel = functools.partial(_mlca_kernel, bt=bt, c=c,
                               local_weight=float(local_weight))

    cost = pl.CostEstimate(
        flops=4 * b * c * mn * L2 + 4 * b * c * mn,
        transcendentals=b * c * (L2 + 1),
        bytes_accessed=2 * b * c * mn * itemsize + 2 * mn * L2 * csize,
    )

    out2 = pl.pallas_call(
        kernel,
        out_shape=jax.ShapeDtypeStruct((b * c, mn), x_nchw.dtype),
        grid=(steps,),
        in_specs=[
            pl.BlockSpec((bt * c, mn), lambda i: (i, 0)),
            pl.BlockSpec((mn, L2), lambda i: (0, 0)),
            pl.BlockSpec((L2, mn), lambda i: (0, 0)),
            pl.BlockSpec(memory_space=pltpu.MemorySpace.SMEM),
            pl.BlockSpec(memory_space=pltpu.MemorySpace.SMEM),
        ],
        out_specs=pl.BlockSpec((bt * c, mn), lambda i: (i, 0)),
        compiler_params=pltpu.CompilerParams(
            dimension_semantics=("parallel",),
            vmem_limit_bytes=vmem_limit),
        cost_estimate=cost,
    )(x2, w_poolT, w_upT,
      w_local.astype(jnp.float32), w_global.astype(jnp.float32))

    return out2.reshape(b, c, m, n)


def mlca_reference(x_nchw, w_local, w_global, *, local_size=5, local_weight=0.5):
    """Pure-JAX mirror of the PyTorch forward (NCHW)."""
    b, c, m, n = x_nchw.shape
    L = local_size
    k = w_local.shape[0]
    pad = (k - 1) // 2
    pr = jnp.asarray(_adaptive_pool_matrix(m, L))
    pc = jnp.asarray(_adaptive_pool_matrix(n, L))
    local = jnp.einsum('ir,bcrs,js->bcij', pr, x_nchw.astype(jnp.float32), pc)
    g = jnp.mean(local, axis=(2, 3))                                  # (b,c)

    def conv1d_same(seq, w):
        N = seq.shape[-1]
        sp = jnp.pad(seq, ((0, 0), (pad, pad)))
        return sum(w[j] * sp[:, j:j + N] for j in range(k))

    seq_local = local.reshape(b, c, L * L).transpose(0, 2, 1).reshape(b, -1)
    y_l = conv1d_same(seq_local, w_local)                             # (b, L*L*c)
    y_g = conv1d_same(g, w_global)                                    # (b, c)

    att_local = jax.nn.sigmoid(
        y_l.reshape(b, L * L, c).transpose(0, 2, 1).reshape(b, c, L, L))
    att_global = jax.nn.sigmoid(y_g)[:, :, None, None]                # (b,c,1,1)
    att_mix = att_global * (1.0 - local_weight) + att_local * local_weight
    ur = jnp.asarray(_adaptive_pool_matrix(L, m))
    uc = jnp.asarray(_adaptive_pool_matrix(L, n))
    att_all = jnp.einsum('ri,bcij,sj->bcrs', ur, att_mix, uc)
    return (x_nchw * att_all).astype(x_nchw.dtype)


if __name__ == "__main__":
    # Module hyper-parameters (in_size = number of channels)
    in_size = 16
    local_size = 5
    gamma, b_hyper, local_weight = 2, 1, 0.5
    t = int(abs(math.log(in_size, 2) + b_hyper) / gamma)
    k = t if t % 2 else t + 1           # odd conv kernel size

    batch, m, n = 2, 16, 16
    key = jax.random.PRNGKey(0)
    kx, kl, kg = jax.random.split(key, 3)
    x = jax.random.normal(kx, (batch, in_size, m, n), jnp.float32)     # NCHW
    # nn.Conv1d(1, 1, k, bias=False) weights, flattened from (1, 1, k)
    w_local = jax.random.normal(kl, (k,), jnp.float32) * 0.5
    w_global = jax.random.normal(kg, (k,), jnp.float32) * 0.5

    out = mlca_pallas(x, w_local, w_global,
                      local_size=local_size, local_weight=local_weight)
    out = jax.block_until_ready(out)

    ref = mlca_reference(x, w_local, w_global,
                         local_size=local_size, local_weight=local_weight)
    np.testing.assert_allclose(np.asarray(out), np.asarray(ref),
                               rtol=2e-3, atol=2e-3)
    print("KERNEL_OK")
</pallas_src>

<mosaic_0001>
module attributes {stable_mosaic.version = 11 : i64} {
  func.func @_mlca_kernel(%arg0: i32, %arg1: memref<32x256xf32, #tpu.memory_space<vmem>>, %arg2: memref<256x25xf32, #tpu.memory_space<vmem>>, %arg3: memref<25x256xf32, #tpu.memory_space<vmem>>, %arg4: memref<3xf32, #tpu.memory_space<smem>>, %arg5: memref<3xf32, #tpu.memory_space<smem>>, %arg6: memref<32x256xf32, #tpu.memory_space<vmem>>) attributes {dimension_semantics = [#tpu.dimension_semantics<parallel>], iteration_bounds = array<i64: 1>, scalar_prefetch = 0 : i64, scratch_operands = 0 : i64, tpu.core_type = #tpu.core_type<tc>, window_params = [{transform_indices = @transform_0, window_bounds = array<i64: 32, 256>}, {pipeline_mode = #tpu.pipeline_mode<synchronous>, transform_indices = @transform_1, window_bounds = array<i64: 256, 25>}, {pipeline_mode = #tpu.pipeline_mode<synchronous>, transform_indices = @transform_2, window_bounds = array<i64: 25, 256>}, {transform_indices = @transform_3, window_bounds = array<i64: 3>}, {transform_indices = @transform_4, window_bounds = array<i64: 3>}, {transform_indices = @transform_5, window_bounds = array<i64: 32, 256>}]} {
    %c0 = arith.constant 0 : index
    %c0_0 = arith.constant 0 : index
    %0 = vector.load %arg1[%c0, %c0_0] : memref<32x256xf32, #tpu.memory_space<vmem>>, vector<32x256xf32>
    %c0_1 = arith.constant 0 : index
    %c0_2 = arith.constant 0 : index
    %1 = vector.load %arg2[%c0_1, %c0_2] : memref<256x25xf32, #tpu.memory_space<vmem>>, vector<256x25xf32>
    %cst = arith.constant dense<0.000000e+00> : vector<32x25xf32>
    %2 = tpu.matmul %0, %1, %cst {dimension_numbers = #tpu.dot_dimension_numbers<[1], [0], [0], [1], [0, 0, 1, 1], [], []>} : vector<32x256xf32>, vector<256x25xf32>, vector<32x25xf32> -> vector<32x25xf32>
    %3 = vector.shape_cast %2 : vector<32x25xf32> to vector<2x16x25xf32>
    %cst_3 = arith.constant 0.000000e+00 : f32
    %4 = vector.broadcast %cst_3 : f32 to vector<2x16x1xf32>
    %5 = vector.extract_strided_slice %3 {offsets = [0, 0, 0], sizes = [2, 16, 24], strides = [1, 1, 1]} : vector<2x16x25xf32> to vector<2x16x24xf32>
    %6 = tpu.concatenate %4, %5 in 2 : vector<2x16x1xf32>, vector<2x16x24xf32> -> vector<2x16x25xf32>
    %7 = vector.extract_strided_slice %3 {offsets = [0, 0, 1], sizes = [2, 16, 24], strides = [1, 1, 1]} : vector<2x16x25xf32> to vector<2x16x24xf32>
    %8 = tpu.concatenate %7, %4 in 2 : vector<2x16x24xf32>, vector<2x16x1xf32> -> vector<2x16x25xf32>
    %9 = tpu.concatenate %6, %3, %8 in 1 : vector<2x16x25xf32>, vector<2x16x25xf32>, vector<2x16x25xf32> -> vector<2x48x25xf32>
    %c1 = arith.constant 1 : index
    %10 = memref.load %arg4[%c1] : memref<3xf32, #tpu.memory_space<smem>>
    %11 = vector.broadcast %10 : f32 to vector<2x16x25xf32>
    %12 = arith.mulf %11, %3 : vector<2x16x25xf32>
    %c0_4 = arith.constant 0 : index
    %13 = memref.load %arg4[%c0_4] : memref<3xf32, #tpu.memory_space<smem>>
    %14 = vector.extract_strided_slice %9 {offsets = [0, 15, 0], sizes = [2, 16, 25], strides = [1, 1, 1]} : vector<2x48x25xf32> to vector<2x16x25xf32>
    %15 = vector.broadcast %13 : f32 to vector<2x16x25xf32>
    %16 = arith.mulf %15, %14 : vector<2x16x25xf32>
    %17 = arith.addf %12, %16 : vector<2x16x25xf32>
    %c2 = arith.constant 2 : index
    %18 = memref.load %arg4[%c2] : memref<3xf32, #tpu.memory_space<smem>>
    %19 = vector.extract_strided_slice %9 {offsets = [0, 17, 0], sizes = [2, 16, 25], strides = [1, 1, 1]} : vector<2x48x25xf32> to vector<2x16x25xf32>
    %20 = vector.broadcast %18 : f32 to vector<2x16x25xf32>
    %21 = arith.mulf %20, %19 : vector<2x16x25xf32>
    %22 = arith.addf %17, %21 : vector<2x16x25xf32>
    %cst_5 = arith.constant dense<0.000000e+00> : vector<2x16xf32>
    %23 = vector.multi_reduction <add>, %3, %cst_5 [2] : vector<2x16x25xf32> to vector<2x16xf32>
    %24 = vector.shape_cast %23 : vector<2x16xf32> to vector<2x16x1xf32>
    %cst_6 = arith.constant 2.500000e+01 : f32
    %25 = vector.broadcast %cst_6 : f32 to vector<2x16x1xf32>
    %26 = arith.divf %24, %25 : vector<2x16x1xf32>
    %c1_7 = arith.constant 1 : index
    %27 = memref.load %arg5[%c1_7] : memref<3xf32, #tpu.memory_space<smem>>
    %28 = vector.broadcast %27 : f32 to vector<2x16x1xf32>
    %29 = arith.mulf %28, %26 : vector<2x16x1xf32>
    %cst_8 = arith.constant 0.000000e+00 : f32
    %30 = vector.broadcast %cst_8 : f32 to vector<2x1x1xf32>
    %31 = tpu.concatenate %30, %26, %30 in 1 : vector<2x1x1xf32>, vector<2x16x1xf32>, vector<2x1x1xf32> -> vector<2x18x1xf32>
    %c0_9 = arith.constant 0 : index
    %32 = memref.load %arg5[%c0_9] : memref<3xf32, #tpu.memory_space<smem>>
    %33 = vector.extract_strided_slice %31 {offsets = [0, 0, 0], sizes = [2, 16, 1], strides = [1, 1, 1]} : vector<2x18x1xf32> to vector<2x16x1xf32>
    %34 = vector.broadcast %32 : f32 to vector<2x16x1xf32>
    %35 = arith.mulf %34, %33 : vector<2x16x1xf32>
    %36 = arith.addf %29, %35 : vector<2x16x1xf32>
    %c2_10 = arith.constant 2 : index
    %37 = memref.load %arg5[%c2_10] : memref<3xf32, #tpu.memory_space<smem>>
    %38 = vector.extract_strided_slice %31 {offsets = [0, 2, 0], sizes = [2, 16, 1], strides = [1, 1, 1]} : vector<2x18x1xf32> to vector<2x16x1xf32>
    %39 = vector.broadcast %37 : f32 to vector<2x16x1xf32>
    %40 = arith.mulf %39, %38 : vector<2x16x1xf32>
    %41 = arith.addf %36, %40 : vector<2x16x1xf32>
    %42 = arith.negf %41 : vector<2x16x1xf32>
    %43 = math.exp %42 : vector<2x16x1xf32>
    %cst_11 = arith.constant 1.000000e+00 : f32
    %44 = vector.broadcast %cst_11 : f32 to vector<2x16x1xf32>
    %45 = arith.addf %44, %43 : vector<2x16x1xf32>
    %46 = arith.divf %44, %45 : vector<2x16x1xf32>
    %cst_12 = arith.constant 5.000000e-01 : f32
    %47 = vector.broadcast %cst_12 : f32 to vector<2x16x1xf32>
    %48 = arith.mulf %46, %47 : vector<2x16x1xf32>
    %49 = arith.negf %22 : vector<2x16x25xf32>
    %50 = math.exp %49 : vector<2x16x25xf32>
    %cst_13 = arith.constant 1.000000e+00 : f32
    %51 = vector.broadcast %cst_13 : f32 to vector<2x16x25xf32>
    %52 = arith.addf %51, %50 : vector<2x16x25xf32>
    %53 = arith.divf %51, %52 : vector<2x16x25xf32>
    %cst_14 = arith.constant 5.000000e-01 : f32
    %54 = vector.broadcast %cst_14 : f32 to vector<2x16x25xf32>
    %55 = arith.mulf %53, %54 : vector<2x16x25xf32>
    %56 = vector.broadcast %48 : vector<2x16x1xf32> to vector<2x16x25xf32>
    %57 = arith.addf %56, %55 : vector<2x16x25xf32>
    %58 = vector.shape_cast %57 : vector<2x16x25xf32> to vector<32x25xf32>
    %c0_15 = arith.constant 0 : index
    %c0_16 = arith.constant 0 : index
    %59 = vector.load %arg3[%c0_15, %c0_16] : memref<25x256xf32, #tpu.memory_space<vmem>>, vector<25x256xf32>
    %cst_17 = arith.constant dense<0.000000e+00> : vector<32x256xf32>
    %60 = tpu.matmul %58, %59, %cst_17 {dimension_numbers = #tpu.dot_dimension_numbers<[1], [0], [0], [1], [0, 0, 1, 1], [], []>} : vector<32x25xf32>, vector<25x256xf32>, vector<32x256xf32> -> vector<32x256xf32>
    %61 = arith.mulf %0, %60 : vector<32x256xf32>
    %c0_18 = arith.constant 0 : index
    %c0_19 = arith.constant 0 : index
    %62 = vector.load %arg6[%c0_18, %c0_19] : memref<32x256xf32, #tpu.memory_space<vmem>>, vector<32x256xf32>
    tpu.vector_store %arg6[%c0_18, %c0_19], %61 {strides = array<i32>} : memref<32x256xf32, #tpu.memory_space<vmem>>, vector<32x256xf32>,
    return
  }
  func.func @transform_0(%arg0: i32) -> (i32, i32) {
    %c0_i32 = arith.constant 0 : i32
    %c0_i32_0 = arith.constant 0 : i32
    return %arg0, %c0_i32 : i32, i32
  }
  func.func @transform_1(%arg0: i32) -> (i32, i32) {
    %c0_i32 = arith.constant 0 : i32
    %c0_i32_0 = arith.constant 0 : i32
    %c0_i32_1 = arith.constant 0 : i32
    return %c0_i32, %c0_i32_0 : i32, i32
  }
  func.func @transform_2(%arg0: i32) -> (i32, i32) {
    %c0_i32 = arith.constant 0 : i32
    %c0_i32_0 = arith.constant 0 : i32
    %c0_i32_1 = arith.constant 0 : i32
    return %c0_i32, %c0_i32_0 : i32, i32
  }
  func.func @transform_3(%arg0: i32) -> i32 {
    %c0_i32 = arith.constant 0 : i32
    %c0_i32_0 = arith.constant 0 : i32
    return %c0_i32 : i32
  }
  func.func @transform_4(%arg0: i32) -> i32 {
    %c0_i32 = arith.constant 0 : i32
    %c0_i32_0 = arith.constant 0 : i32
    return %c0_i32 : i32
  }
  func.func @transform_5(%arg0: i32) -> (i32, i32) {
    %c0_i32 = arith.constant 0 : i32
    %c0_i32_0 = arith.constant 0 : i32
    return %arg0, %c0_i32 : i32, i32
  }
}

</mosaic_0001>

<bundles_post_ra>
// kernel: mlca_pallas.1
= control target key start
LH: loop header
LB: loop body
LE: loop exit
PB: predicated region body
PF: predicated region fallthrough
CT: control target
= control target key end

     0   :  { %10 = vsyncpa [#allocation3], 0  ;;  %s1070_s0 = inlined_call_operand.vmem [shape: f32[32,256], index: 0, kind: input, shape index: {}]   ;;  %s1071_s1 = inlined_call_operand.vmem [shape: f32[256,25], index: 1, kind: input, shape index: {}]   ;;  %s1072_s2 = inlined_call_operand.vmem [shape: f32[25,256], index: 2, kind: input, shape index: {}]   ;;  %s1073_s3 = inlined_call_operand.vmem [shape: f32[3], index: 3, kind: input, shape index: {}]   ;;  %s1074_s4 = inlined_call_operand.vmem [shape: f32[3], index: 4, kind: input, shape index: {}]   ;;  %s1075_s5 = inlined_call_operand.vmem [shape: f32[32,256], index: 5, kind: output, shape index: {}]  }
   0x1   :  { %s23_s20 = sshll.u32 %s1073_s3, 4  ;;  %s24_s20 = int_to_ptr.vmem [resolvable:$true] %s23_s20 }
   0x2   :  { %11 = vsyncpa [#allocation5], 0  ;;  %s32_s23 = sshll.u32 %s1074_s4, 4  ;;  %s712_s24 = smov [#allocation2]   ;;  %s33_s23 = int_to_ptr.vmem [resolvable:$true] %s32_s23 }
   0x3   :  { %26 = dma.vmem_to_smem %s24_s20, 16, %s712_s24, [#allocation3]  }
   0x4   :  { %s713_s25 = smov [#allocation4]  }
   0x5   :  { %35 = dma.vmem_to_smem %s33_s23, 16, %s713_s25, [#allocation5]  }
   0x6   :  { %708 = dma.done.wait [#allocation3], 16  }
   0x7   :  { %709 = vsyncadd [#allocation3], 4294967280 }
   0x8   :  { %710 = dma.done.wait [#allocation5], 16  }
   0x9   :  { %711 = vsyncadd [#allocation5], 4294967280 }
   0xa   :  { %44 = sfence }
   0xb   :  { %v68_v0 = vld [vmem:[%s1071_s1 + $0x78] sm:$0xff]  ;;  %v67_v2 = vld [vmem:[%s1071_s1 + $0x70] sm:$0xff]  ;;  %v66_v4 = vld [vmem:[%s1071_s1 + $0x68] sm:$0xff]  ;;  %s171_s24 = sld [smem:[#allocation2]]  ;;  %vm237_vm0 = vcmask 203776   ;;  %vm185_vm1 = vcmask 1040384  }
   0xc   :  { %v84_v1 = vld [vmem:[%s1071_s1 + $0xf8] sm:$0xff]  ;;  %85 = vmatpush.msra.mxu0 %v68_v0  ;;  %v83_v3 = vld [vmem:[%s1071_s1 + $0xf0] sm:$0xff]  ;;  %v82_v5 = vld [vmem:[%s1071_s1 + $0xe8] sm:$0xff]  ;;  %s621_s25 = sld [smem:[#allocation2 + $0x2]]  ;;  %vm218_vm2 = vcmask 1046528   ;;  %s715_s27 = smov 127  }
   0xd   :  { %114 = vmatpush.msra.mxu1 %v84_v1  ;;  %v65_v6 = vld [vmem:[%s1071_s1 + $0x60] sm:$0xff]  ;;  %v64_v8 = vld [vmem:[%s1071_s1 + $0x58] sm:$0xff]  ;;  %v63_v10 = vld [vmem:[%s1071_s1 + $0x50] sm:$0xff]  ;;  %s620_s26 = sld [smem:[#allocation2 + $0x1]]  ;;  %vm151_vm3 = vcmask 7168   ;;  %vm162_vm4 = vcmask 195584  }
   0xe   :  { %86 = vmatpush.msra.mxu0 %v67_v2  ;;  %v81_v7 = vld [vmem:[%s1071_s1 + $0xe0] sm:$0xff]  ;;  %v80_v9 = vld [vmem:[%s1071_s1 + $0xd8] sm:$0xff]  ;;  %v79_v11 = vld [vmem:[%s1071_s1 + $0xd0] sm:$0xff]  ;;  %s623_s3 = sld [smem:[#allocation4 + $0x2]]  ;;  %vm311_vm6 = vcmask 1045504  }
   0xf   :  { %115 = vmatpush.msra.mxu1 %v83_v3  ;;  %v62_v12 = vld [vmem:[%s1071_s1 + $0x48] sm:$0xff]  ;;  %v61_v14 = vld [vmem:[%s1071_s1 + $0x40] sm:$0xff]  ;;  %v60_v16 = vld [vmem:[%s1071_s1 + $0x38] sm:$0xff]  ;;  %s287_s28 = sld [smem:[#allocation4]] }
  0x10   :  { %87 = vmatpush.msra.mxu0 %v66_v4  ;;  %v78_v13 = vld [vmem:[%s1071_s1 + $0xc8] sm:$0xff]  ;;  %v77_v15 = vld [vmem:[%s1071_s1 + $0xc0] sm:$0xff]  ;;  %v76_v17 = vld [vmem:[%s1071_s1 + $0xb8] sm:$0xff]  ;;  %s622_s29 = sld [smem:[#allocation4 + $0x1]] }
  0x11   :  { %116 = vmatpush.msra.mxu1 %v82_v5  ;;  %v59_v18 = vld [vmem:[%s1071_s1 + $0x30] sm:$0xff]  ;;  %v58_v20 = vld [vmem:[%s1071_s1 + $0x28] sm:$0xff]  ;;  %v57_v22 = vld [vmem:[%s1071_s1 + $0x20] sm:$0xff]  ;;  %v902_v44 = vstv %s171_s24 }
  0x12   :  { %88 = vmatpush.msra.mxu0 %v65_v6  ;;  %v75_v19 = vld [vmem:[%s1071_s1 + $0xb0] sm:$0xff]  ;;  %v74_v21 = vld [vmem:[%s1071_s1 + $0xa8] sm:$0xff]  ;;  %v73_v23 = vld [vmem:[%s1071_s1 + $0xa0] sm:$0xff]  ;;  %v904_v45 = vstv %s621_s25 }
  0x13   :  { %117 = vmatpush.msra.mxu1 %v81_v7  ;;  %v56_v24 = vld [vmem:[%s1071_s1 + $0x18] sm:$0xff]  ;;  %v55_v26 = vld [vmem:[%s1071_s1 + $0x10] sm:$0xff]  ;;  %v54_v28 = vld [vmem:[%s1071_s1 + $0x8] sm:$0xff]  ;;  %v916_v54 = vstv %s620_s26 }
  0x14   :  { %89 = vmatpush.msra.mxu0 %v64_v8  ;;  %v72_v25 = vld [vmem:[%s1071_s1 + $0x98] sm:$0xff]  ;;  %v71_v27 = vld [vmem:[%s1071_s1 + $0x90] sm:$0xff]  ;;  %v70_v29 = vld [vmem:[%s1071_s1 + $0x88] sm:$0xff] }
  0x15   :  { %118 = vmatpush.msra.mxu1 %v80_v9  ;;  %v53_v30 = vld [vmem:[%s1071_s1] sm:$0xff]  ;;  %v858_v33 = vld [vmem:[%s1070_s0 + $0x8] sm:$0xff]  ;;  %v865_v34 = vld [vmem:[%s1070_s0 + $0x10] sm:$0xff] }
  0x16   :  { %90 = vmatpush.msra.mxu0 %v63_v10  ;;  %v69_v31 = vld [vmem:[%s1071_s1 + $0x80] sm:$0xff]  ;;  %v870_v35 = vld [vmem:[%s1070_s0 + $0x18] sm:$0xff]  ;;  %v882_v37 = vld [vmem:[%s1070_s0 + $0x28] sm:$0xff] }
  0x17   :  { %119 = vmatpush.msra.mxu1 %v79_v11  ;;  %v853_v32 = vld [vmem:[%s1070_s0] sm:$0xff]  ;;  %v889_v38 = vld [vmem:[%s1070_s0 + $0x30] sm:$0xff]  ;;  %v894_v39 = vld [vmem:[%s1070_s0 + $0x38] sm:$0xff] }
  0x18   :  { %91 = vmatpush.msra.mxu0 %v62_v12  ;;  %v877_v36 = vld [vmem:[%s1070_s0 + $0x20] sm:$0xff]  ;;  %s714_s0 = smov 1  }
  0x19   :  { %120 = vmatpush.msra.mxu1 %v78_v13 }
  0x1a   :  { %92 = vmatpush.msra.mxu0 %v61_v14 }
  0x1b   :  { %121 = vmatpush.msra.mxu1 %v77_v15 }
  0x1c   :  { %93 = vmatpush.msra.mxu0 %v60_v16 }
  0x1d   :  { %122 = vmatpush.msra.mxu1 %v76_v17 }
  0x1e   :  { %94 = vmatpush.msra.mxu0 %v59_v18 }
  0x1f   :  { %123 = vmatpush.msra.mxu1 %v75_v19  ;;  %v716_v19 = vmov 25.0  }
  0x20   :  { %95 = vmatpush.msra.mxu0 %v58_v20  ;;  %650 = vrcp.f32 %v716_v19 }
  0x21   :  { %124 = vmatpush.msra.mxu1 %v74_v21 }
  0x22   :  { %96 = vmatpush.msra.mxu0 %v57_v22 }
  0x23   :  { %125 = vmatpush.msra.mxu1 %v73_v23 }
  0x24   :  { %97 = vmatpush.msra.mxu0 %v56_v24 }
  0x25   :  { %126 = vmatpush.msra.mxu1 %v72_v25 }
  0x26   :  { %98 = vmatpush.msra.mxu0 %v55_v26  ;;  %v651_v20 = vpop.eup %650 }
  0x27   :  { %127 = vmatpush.msra.mxu1 %v71_v27  ;;  %v251_v22 = vmul.f32 25.0, %v651_v20  ;;  %vm255_vm5 = vweird.f32 %v651_v20 }
  0x28   :  { %99 = vmatpush.msra.mxu0 %v54_v28 }
  0x29   :  { %128 = vmatpush.msra.mxu1 %v70_v29  ;;  %v252_v26 = vsub.f32 1.0, %v251_v22 }
  0x2a   :  { %100 = vmatpush.msra.mxu0 %v53_v30 }
  0x2b   :  { %129 = vmatpush.msra.mxu1 %v69_v31  ;;  %101 = vmatmul.f32.vlgmr.msra.gmra.mxu0 %v853_v32  ;;  %v253_v31 = vmul.f32 %v651_v20, %v252_v26 }
  0x2c   :  { %130 = vmatmul.f32.vlgmr.msra.gmra.mxu1 %v858_v33 }
  0x33   :  { %104 = vmatmul.f32.gmra.mxu0 %v865_v34 }
  0x34   :  { %133 = vmatmul.f32.gmra.mxu1 %v870_v35 }
  0x3b   :  { %107 = vmatmul.f32.gmra.mxu0 %v877_v36 }
  0x3c   :  { %136 = vmatmul.f32.gmra.mxu1 %v882_v37 }
  0x43   :  { %110 = vmatmul.f32.gmra.mxu0 %v889_v38 }
  0x44   :  { %139 = vmatmul.f32.gmra.mxu1 %v894_v39 }
  0xa8   :  { %v102_v40 = vpop.f32.mrf.mxu0 }
  0xa9   :  { %v131_v41 = vpop.f32.mrf.mxu1 }
  0xaa   :  { %v898_v42 = vadd.f32 %v131_v41, %v102_v40 }
  0xac   :  { %v238_v43 = vsel %vm237_vm0, %v898_v42, 0.0  ;;  %v174_v49 = vmul.f32 %v902_v44, %v898_v42  ;;  %v206_v50 = vmul.f32 %v904_v45, %v898_v42  ;;  %v167_v27 = vmul.f32 %v916_v54, %v898_v42 }
  0xad   :  { %239 = vadd.xlane.f32.xlu0 %v238_v43 }
  0xae   :  { %v187_v55 = vrot.slane %v174_v49, 7  ;;  %v219_v56 = vrot.slane %v206_v50, 1 }
  0xb0   :  { %v105_v46 = vpop.f32.mrf.mxu0 }
  0xb1   :  { %v134_v47 = vpop.f32.mrf.mxu1 }
  0xb2   :  { %v135_v48 = vadd.f32 %v134_v47, %v105_v46  ;;  %v254_v47 = vadd.f32 %v651_v20, %v253_v31 }
  0xb4   :  { %145 = vrot.lane.b32.xlu2 %v135_v48, %s714_s0  ;;  %v241_v51 = vsel %vm237_vm0, %v135_v48, 0.0  ;;  %v913_v52 = vmul.f32 %v904_v45, %v135_v48  ;;  %v175_v53 = vmul.f32 %v902_v44, %v135_v48  ;;  %v168_v59 = vmul.f32 %v916_v54, %v135_v48 }
  0xb5   :  { %242 = vadd.xlane.f32.xlu0 %v241_v51 }
  0xb6   :  { %v220_v57 = vrot.slane %v913_v52, 1  ;;  %v189_v58 = vrot.slane %v175_v53, 7 }
  0xb8   :  { %v221_v60 = vsel %vm218_vm2, %v219_v56, %v220_v57  ;;  %v190_v61 = vsel %vm185_vm1, %v187_v55, %v189_v58  ;;  %v108_v62 = vpop.f32.mrf.mxu0 }
  0xb9   :  { %v137_v63 = vpop.f32.mrf.mxu1  ;;  %v201_v0 = vadd.f32 %v190_v61, %v168_v59  ;;  %v288_v59 = vstv %s287_s28  ;;  %v262_v61 = vstv %s622_s29 }
  0xba   :  { %v922_v1 = vadd.f32 %v137_v63, %v108_v62 }
  0xbc   :  { %156 = vrot.lane.b32.xlu2 %v898_v42, %s715_s27  ;;  %v244_v2 = vsel %vm237_vm0, %v922_v1, 0.0  ;;  %v929_v6 = vmul.f32 %v902_v44, %v922_v1  ;;  %v209_v7 = vmul.f32 %v904_v45, %v922_v1  ;;  %v256_v42 = vsel %vm255_vm5, %v651_v20, %v254_v47 }
  0xbd   :  { %245 = vadd.xlane.f32.xlu1 %v244_v2  ;;  %v169_v47 = vmul.f32 %v916_v54, %v922_v1 }
  0xbe   :  { %v192_v11 = vrot.slane %v929_v6, 7  ;;  %v224_v12 = vrot.slane %v209_v7, 1  ;;  %v521_v6 = vld [vmem:[%s1072_s2 + $0x38] sm:$0x1] }
  0xbf   :  { %637 = vmatpush.msk.msra.mxu3 %vm185_vm1, %v521_v6 }
  0xc0   :  { %v111_v3 = vpop.f32.mrf.mxu0 }
  0xc1   :  { %v140_v4 = vpop.f32.mrf.mxu1 }
  0xc2   :  { %v141_v5 = vadd.f32 %v140_v4, %v111_v3 }
  0xc4   :  { %v247_v8 = vsel %vm237_vm0, %v141_v5, 0.0  ;;  %v935_v9 = vmul.f32 %v904_v45, %v141_v5  ;;  %v178_v10 = vmul.f32 %v902_v44, %v141_v5  ;;  %v170_v15 = vmul.f32 %v916_v54, %v141_v5 }
  0xc5   :  { %248 = vadd.xlane.f32.xlu1 %v247_v8 }
  0xc6   :  { %v225_v13 = vrot.slane %v935_v9, 1  ;;  %v194_v14 = vrot.slane %v178_v10, 7 }
  0xc8   :  { %v944_v16 = vsel %vm218_vm2, %v224_v12, %v225_v13  ;;  %v195_v17 = vsel %vm185_vm1, %v192_v11, %v194_v14 }
  0xc9   :  { %147 = vrot.lane.b32.xlu0 %v141_v5, %s714_s0  ;;  %v950_v18 = vadd.f32 %v195_v17, %v170_v15 }
  0xde   :  { %158 = vrot.lane.b32.xlu1 %v922_v1, %s715_s27 }
 0x10e   :  { %v146_v21 = vpop.permute.xlu2 %145 }
 0x10f   :  { %v152_v23 = vsel %vm151_vm3, 0.0, %v146_v21 }
 0x110   :  { %v173_v24 = vmul.f32 %v902_v44, %v152_v23 }
 0x112   :  { %v186_v25 = vrot.slane %v173_v24, 7  ;;  %v717_v24 = vmov 0  }
 0x113   :  { %648 = vset.pattern.permute.xlu2 %v717_v24  ;;  %649 = vset.pattern.permute.xlu0 %v717_v24 }
 0x114   :  { %v188_v28 = vsel %vm185_vm1, %v186_v25, %v187_v55  ;;  %v298_v55 = vstv %s623_s3 }
 0x115   :  { %v200_v29 = vadd.f32 %v188_v28, %v167_v27 }
 0x116   :  { %v157_v30 = vpop.permute.xlu2 %156 }
 0x117   :  { %v958_v40 = vadd.f32 %v221_v60, %v200_v29  ;;  %v163_v41 = vsel %vm162_vm4, %v157_v30, 0.0 }
 0x118   :  { %v208_v43 = vmul.f32 %v904_v45, %v163_v41 }
 0x11a   :  { %v222_v46 = vrot.slane %v208_v43, 1 }
 0x11c   :  { %v223_v48 = vsel %vm218_vm2, %v220_v57, %v222_v46 }
 0x11d   :  { %v963_v49 = vadd.f32 %v223_v48, %v201_v0 }
 0x120   :  { %v240_v50 = vpop.xlane.xlu0 %239 }
 0x121   :  { %v257_v51 = vmul.f32 %v256_v42, %v240_v50 }
 0x123   :  { %v271_v52 = vrot.slane %v257_v51, 7  ;;  %v263_v7 = vmul.f32 %v262_v61, %v257_v51 }
 0x125   :  { %v283_v56 = vsel %vm185_vm1, 0.0, %v271_v52 }
 0x126   :  { %v299_v62 = vmul.f32 %v298_v55, %v283_v56  ;;  %v289_v63 = vmul.f32 %v288_v59, %v283_v56 }
 0x128   :  { %v243_v53 = vpop.xlane.xlu0 %242  ;;  %v312_v8 = vrot.slane %v299_v62, 2  ;;  %v293_v17 = vadd.f32 %v289_v63, %v263_v7 }
 0x129   :  { %v258_v58 = vmul.f32 %v256_v42, %v243_v53 }
 0x12b   :  { %v272_v60 = vrot.slane %v258_v58, 7  ;;  %v264_v2 = vmul.f32 %v262_v61, %v258_v58 }
 0x12d   :  { %v273_v57 = vsel %vm185_vm1, %v271_v52, %v272_v60  ;;  %v285_v0 = vsel %vm185_vm1, %v272_v60, 0.0 }
 0x12e   :  { %v290_v3 = vmul.f32 %v288_v59, %v273_v57  ;;  %v300_v4 = vmul.f32 %v298_v55, %v273_v57  ;;  %v301_v5 = vmul.f32 %v298_v55, %v285_v0 }
 0x130   :  { %v294_v10 = vadd.f32 %v290_v3, %v264_v2  ;;  %v313_v12 = vrot.slane %v300_v4, 2  ;;  %v315_v14 = vrot.slane %v301_v5, 2  ;;  %v246_v15 = vpop.xlane.xlu1 %245 }
 0x131   :  { %v259_v19 = vmul.f32 %v256_v42, %v246_v15 }
 0x132   :  { %v314_v20 = vsel %vm311_vm6, %v312_v8, %v313_v12  ;;  %v316_v21 = vsel %vm311_vm6, %v313_v12, %v315_v14  ;;  %v520_v12 = vld [vmem:[%s1072_s2 + $0x30] sm:$0x1] }
 0x133   :  { %v326_v22 = vadd.f32 %v314_v20, %v293_v17  ;;  %v327_v23 = vadd.f32 %v316_v21, %v294_v10  ;;  %v274_v25 = vrot.slane %v259_v19, 7  ;;  %v265_v0 = vmul.f32 %v262_v61, %v259_v19  ;;  %632 = vmatpush.msk.msra.mxu2 %vm185_vm1, %v520_v12  ;;  %v519_v17 = vld [vmem:[%s1072_s2 + $0x28] sm:$0xff]  ;;  %v516_v21 = vld [vmem:[%s1072_s2 + $0x10] sm:$0xff] }
 0x134   :  { %582 = vmatpush.msra.mxu3 %v519_v17 }
 0x135   :  { %v624_v26 = vmul.f32 -1.442695, %v326_v22  ;;  %v625_v27 = vmul.f32 -1.442695, %v327_v23  ;;  %v284_v28 = vsel %vm185_vm1, 0.0, %v274_v25  ;;  %v517_v22 = vld [vmem:[%s1072_s2 + $0x18] sm:$0xff] }
 0x136   :  { %v302_v31 = vmul.f32 %v298_v55, %v284_v28  ;;  %v291_v46 = vmul.f32 %v288_v59, %v284_v28  ;;  %583 = vmatpush.msra.mxu3 %v517_v22  ;;  %v629_v22 = vmul.f32 -1.442695, %v963_v49 }
 0x137   :  { %652 = vpow2.f32 %v624_v26 }
 0x138   :  { %654 = vpow2.f32 %v625_v27  ;;  %v249_v29 = vpop.xlane.xlu1 %248  ;;  %v317_v2 = vrot.slane %v302_v31, 2  ;;  %v295_v5 = vadd.f32 %v291_v46, %v265_v0 }
 0x139   :  { %v260_v30 = vmul.f32 %v256_v42, %v249_v29 }
 0x13b   :  { %v275_v41 = vrot.slane %v260_v30, 7  ;;  %v148_v43 = vpop.permute.xlu0 %147  ;;  %v266_v51 = vmul.f32 %v262_v61, %v260_v30 }
 0x13c   :  { %v153_v48 = vsel %vm151_vm3, 0.0, %v148_v43 }
 0x13d   :  { %v653_v50 = vpop.eup %652  ;;  %v276_v52 = vsel %vm185_vm1, %v274_v25, %v275_v41  ;;  %v286_v53 = vsel %vm185_vm1, %v275_v41, 0.0  ;;  %v176_v56 = vmul.f32 %v902_v44, %v153_v48 }
 0x13e   :  { %v655_v58 = vpop.eup %654  ;;  %v342_v60 = vadd.f32 1.0, %v653_v50  ;;  %v292_v42 = vmul.f32 %v288_v59, %v276_v52  ;;  %v303_v62 = vmul.f32 %v298_v55, %v276_v52  ;;  %v304_v63 = vmul.f32 %v298_v55, %v286_v53 }
 0x13f   :  { %v977_v57 = vadd.f32 1.0, %v655_v58  ;;  %v191_v54 = vrot.slane %v176_v56, 7 }
 0x140   :  { %656 = vrcp.f32 %v342_v60  ;;  %v296_v1 = vadd.f32 %v292_v42, %v266_v51  ;;  %v318_v3 = vrot.slane %v303_v62, 2  ;;  %v320_v4 = vrot.slane %v304_v63, 2 }
 0x141   :  { %658 = vrcp.f32 %v977_v57  ;;  %v193_v44 = vsel %vm185_vm1, %v191_v54, %v192_v11  ;;  %v355_v25 = vand.u32 2147483647, %v342_v60  ;;  %v357_v26 = vand.u32 2147483648, %v342_v60 }
 0x142   :  { %v319_v59 = vsel %vm311_vm6, %v317_v2, %v318_v3  ;;  %v321_v55 = vsel %vm311_vm6, %v318_v3, %v320_v4  ;;  %v202_v7 = vadd.f32 %v193_v44, %v169_v47  ;;  %vm351_vm8 = vweird.f32 %v342_v60 }
 0x143   :  { %v328_v8 = vadd.f32 %v319_v59, %v295_v5  ;;  %v329_v61 = vadd.f32 %v321_v55, %v296_v1  ;;  %vm356_vm10 = vcmp.eq.f32.partialorder %v355_v25, 8.507059e+37  ;;  %v358_v46 = vor.u32 1.1754944e-38, %v357_v26 }
 0x144   :  { %v986_v10 = vadd.f32 %v944_v16, %v202_v7  ;;  %v518_v16 = vld [vmem:[%s1072_s2 + $0x20] sm:$0xff]  ;;  %vm366_vm12 = vweird.f32 %v977_v57  ;;  %v372_v53 = vand.u32 2147483648, %v977_v57 }
 0x145   :  { %v626_v14 = vmul.f32 -1.442695, %v328_v8  ;;  %v627_v15 = vmul.f32 -1.442695, %v329_v61  ;;  %553 = vmatpush.msra.mxu2 %v518_v16 }
 0x146   :  { %v657_v11 = vpop.eup %656  ;;  %v373_v0 = vor.u32 1.1754944e-38, %v372_v53  ;;  %v630_v25 = vmul.f32 -1.442695, %v986_v10 }
 0x147   :  { %v659_v19 = vpop.eup %658  ;;  %660 = vpow2.f32 %v626_v14  ;;  %v347_v20 = vmul.f32 %v657_v11, %v342_v60  ;;  %554 = vmatpush.msra.mxu2 %v516_v21  ;;  %vm352_vm7 = vweird.f32 %v657_v11  ;;  %v370_v60 = vand.u32 2147483647, %v977_v57 }
 0x148   :  { %662 = vpow2.f32 %v627_v15  ;;  %v362_v23 = vmul.f32 %v659_v19, %v977_v57  ;;  %vm353_vm9 = vmor %vm351_vm8, %vm352_vm7  ;;  %vm367_vm11 = vweird.f32 %v659_v19  ;;  %v628_v21 = vmul.f32 -1.442695, %v958_v40 }
 0x149   :  { %v348_v24 = vsub.f32 1.0, %v347_v20  ;;  %vm368_vm13 = vmor %vm366_vm12, %vm367_vm11  ;;  %vm371_vm14 = vcmp.eq.f32.partialorder %v370_v60, 8.507059e+37 }
 0x14a   :  { %v363_v27 = vsub.f32 1.0, %v362_v23 }
 0x14b   :  { %v349_v28 = vmul.f32 %v657_v11, %v348_v24 }
 0x14c   :  { %v364_v29 = vmul.f32 %v659_v19, %v363_v27  ;;  %v514_v27 = vld [vmem:[%s1072_s2] sm:$0xff] }
 0x14d   :  { %v661_v30 = vpop.eup %660  ;;  %v350_v31 = vadd.f32 %v657_v11, %v349_v28  ;;  %v515_v28 = vld [vmem:[%s1072_s2 + $0x8] sm:$0xff]  ;;  %555 = vmatpush.msra.mxu2 %v514_v27 }
 0x14e   :  { %v663_v41 = vpop.eup %662  ;;  %v344_v43 = vadd.f32 1.0, %v661_v30  ;;  %v365_v50 = vadd.f32 %v659_v19, %v364_v29  ;;  %584 = vmatpush.msra.mxu3 %v515_v28 }
 0x14f   :  { %v345_v47 = vadd.f32 1.0, %v663_v41  ;;  %v354_v48 = vsel %vm353_vm9, %v657_v11, %v350_v31 }
 0x150   :  { %664 = vrcp.f32 %v344_v43  ;;  %v159_v51 = vpop.permute.xlu1 %158  ;;  %v359_v52 = vsel %vm356_vm10, %v358_v46, %v354_v48  ;;  %v369_v62 = vsel %vm368_vm13, %v659_v19, %v365_v50  ;;  %v387_v59 = vand.u32 2147483648, %v344_v43 }
 0x151   :  { %666 = vrcp.f32 %v345_v47  ;;  %v164_v56 = vsel %vm162_vm4, %v159_v51, 0.0  ;;  %v406_v58 = vmul.f32 0.5, %v359_v52  ;;  %v374_v1 = vsel %vm371_vm14, %v373_v0, %v369_v62 }
 0x152   :  { %v211_v42 = vmul.f32 %v904_v45, %v164_v56  ;;  %v407_v44 = vmul.f32 0.5, %v374_v1  ;;  %v385_v8 = vand.u32 2147483647, %v344_v43  ;;  %v402_v61 = vand.u32 2147483648, %v345_v47 }
 0x153   :  { %492 = vperm.xlu2 %648, %v406_v58   ;;  %v400_v9 = vand.u32 2147483647, %v345_v47  ;;  %v388_v14 = vor.u32 1.1754944e-38, %v387_v59  ;;  %vm396_vm4 = vweird.f32 %v345_v47  ;;  %668 = vpow2.f32 %v628_v21 }
 0x154   :  { %v227_v63 = vrot.slane %v211_v42, 1  ;;  %vm386_vm5 = vcmp.eq.f32.partialorder %v385_v8, 8.507059e+37  ;;  %v403_v6 = vor.u32 1.1754944e-38, %v402_v61  ;;  %670 = vpow2.f32 %v629_v22 }
 0x155   :  { %vm401_vm7 = vcmp.eq.f32.partialorder %v400_v9, 8.507059e+37 }
 0x156   :  { %v665_v2 = vpop.eup %664  ;;  %v228_v54 = vsel %vm218_vm2, %v225_v13, %v227_v63  ;;  %vm381_vm2 = vweird.f32 %v344_v43 }
 0x157   :  { %v667_v3 = vpop.eup %666  ;;  %v1018_v4 = vadd.f32 %v228_v54, %v950_v18  ;;  %v377_v5 = vmul.f32 %v665_v2, %v344_v43  ;;  %vm382_vm15 = vweird.f32 %v665_v2 }
 0x158   :  { %v392_v57 = vmul.f32 %v667_v3, %v345_v47  ;;  %vm397_vm1 = vweird.f32 %v667_v3  ;;  %vm383_vm3 = vmor %vm381_vm2, %vm382_vm15 }
 0x159   :  { %v378_v45 = vsub.f32 1.0, %v377_v5  ;;  %vm398_vm6 = vmor %vm396_vm4, %vm397_vm1  ;;  %v669_v23 = vpop.eup %668  ;;  %v631_v53 = vmul.f32 -1.442695, %v1018_v4 }
 0x15a   :  { %v393_v55 = vsub.f32 1.0, %v392_v57  ;;  %v422_v24 = vadd.f32 1.0, %v669_v23  ;;  %v671_v26 = vpop.eup %670 }
 0x15b   :  { %497 = vperm.xlu2 %648, %v407_v44   ;;  %v379_v7 = vmul.f32 %v665_v2, %v378_v45  ;;  %v423_v40 = vadd.f32 1.0, %v671_v26 }
 0x15c   :  { %v394_v12 = vmul.f32 %v667_v3, %v393_v55  ;;  %672 = vrcp.f32 %v422_v24  ;;  %v437_v51 = vand.u32 2147483648, %v422_v24  ;;  %vm431_vm9 = vweird.f32 %v422_v24 }
 0x15d   :  { %v380_v13 = vadd.f32 %v665_v2, %v379_v7  ;;  %674 = vpow2.f32 %v630_v25  ;;  %v435_v52 = vand.u32 2147483647, %v422_v24  ;;  %vm446_vm13 = vweird.f32 %v423_v40 }
 0x15e   :  { %v395_v18 = vadd.f32 %v667_v3, %v394_v12  ;;  %676 = vrcp.f32 %v423_v40  ;;  %v438_v42 = vor.u32 1.1754944e-38, %v437_v51  ;;  %v450_v1 = vand.u32 2147483647, %v423_v40 }
 0x15f   :  { %v384_v15 = vsel %vm383_vm3, %v665_v2, %v380_v13  ;;  %vm436_vm11 = vcmp.eq.f32.partialorder %v435_v52, 8.507059e+37  ;;  %v452_v2 = vand.u32 2147483648, %v423_v40 }
 0x160   :  { %v389_v11 = vsel %vm386_vm5, %v388_v14, %v384_v15  ;;  %v399_v16 = vsel %vm398_vm6, %v667_v3, %v395_v18  ;;  %vm451_vm15 = vcmp.eq.f32.partialorder %v450_v1, 8.507059e+37 }
 0x161   :  { %v408_v17 = vmul.f32 0.5, %v389_v11  ;;  %v404_v19 = vsel %vm401_vm7, %v403_v6, %v399_v16  ;;  %v453_v45 = vor.u32 1.1754944e-38, %v452_v2 }
 0x162   :  { %v409_v20 = vmul.f32 0.5, %v404_v19  ;;  %v673_v49 = vpop.eup %672 }
 0x163   :  { %502 = vperm.xlu2 %648, %v408_v17   ;;  %v675_v29 = vpop.eup %674  ;;  %v427_v30 = vmul.f32 %v673_v49, %v422_v24  ;;  %vm432_vm8 = vweird.f32 %v673_v49 }
 0x164   :  { %507 = vperm.xlu0 %649, %v409_v20   ;;  %v424_v31 = vadd.f32 1.0, %v675_v29  ;;  %v677_v41 = vpop.eup %676  ;;  %vm433_vm10 = vmor %vm431_vm9, %vm432_vm8 }
 0x165   :  { %v428_v10 = vsub.f32 1.0, %v427_v30  ;;  %v442_v46 = vmul.f32 %v677_v41, %v423_v40  ;;  %vm447_vm12 = vweird.f32 %v677_v41 }
 0x166   :  { %678 = vrcp.f32 %v424_v31  ;;  %vm448_vm14 = vmor %vm446_vm13, %vm447_vm12  ;;  %v467_v8 = vand.u32 2147483648, %v424_v31  ;;  %vm461_vm2 = vweird.f32 %v424_v31  ;;  %v465_v12 = vand.u32 2147483647, %v424_v31 }
 0x167   :  { %v429_v43 = vmul.f32 %v673_v49, %v428_v10  ;;  %v443_v48 = vsub.f32 1.0, %v442_v46  ;;  %680 = vpow2.f32 %v631_v53 }
 0x168   :  { %v468_v18 = vor.u32 1.1754944e-38, %v467_v8  ;;  %vm466_vm4 = vcmp.eq.f32.partialorder %v465_v12, 8.507059e+37 }
 0x169   :  { %v430_v47 = vadd.f32 %v673_v49, %v429_v43  ;;  %v444_v58 = vmul.f32 %v677_v41, %v443_v48 }
 0x16b   :  { %v434_v56 = vsel %vm433_vm10, %v673_v49, %v430_v47  ;;  %v445_v63 = vadd.f32 %v677_v41, %v444_v58 }
 0x16c   :  { %v679_v50 = vpop.eup %678  ;;  %v439_v62 = vsel %vm436_vm11, %v438_v42, %v434_v56 }
 0x16d   :  { %v457_v60 = vmul.f32 %v679_v50, %v424_v31  ;;  %v486_v54 = vmul.f32 0.5, %v439_v62  ;;  %v449_v57 = vsel %vm448_vm14, %v677_v41, %v445_v63  ;;  %v681_v44 = vpop.eup %680  ;;  %vm462_vm1 = vweird.f32 %v679_v50 }
 0x16e   :  { %v454_v59 = vsel %vm451_vm15, %v453_v45, %v449_v57  ;;  %v425_v55 = vadd.f32 1.0, %v681_v44  ;;  %vm463_vm3 = vmor %vm461_vm2, %vm462_vm1 }
 0x16f   :  { %v458_v0 = vsub.f32 1.0, %v457_v60  ;;  %v487_v61 = vmul.f32 0.5, %v454_v59 }
 0x170   :  { %682 = vrcp.f32 %v425_v55  ;;  %v482_v23 = vand.u32 2147483648, %v425_v55  ;;  %vm476_vm6 = vweird.f32 %v425_v55  ;;  %v480_v24 = vand.u32 2147483647, %v425_v55 }
 0x171   :  { %v459_v4 = vmul.f32 %v679_v50, %v458_v0 }
 0x172   :  { %v483_v26 = vor.u32 1.1754944e-38, %v482_v23  ;;  %vm481_vm8 = vcmp.eq.f32.partialorder %v480_v24, 8.507059e+37 }
 0x173   :  { %v460_v7 = vadd.f32 %v679_v50, %v459_v4 }
 0x175   :  { %v464_v14 = vsel %vm463_vm3, %v679_v50, %v460_v7 }
 0x176   :  { %v469_v15 = vsel %vm466_vm4, %v468_v18, %v464_v14  ;;  %v683_v6 = vpop.eup %682 }
 0x177   :  { %v488_v11 = vmul.f32 0.5, %v469_v15  ;;  %v472_v19 = vmul.f32 %v683_v6, %v425_v55  ;;  %vm477_vm5 = vweird.f32 %v683_v6 }
 0x178   :  { %vm478_vm7 = vmor %vm476_vm6, %vm477_vm5 }
 0x179   :  { %v473_v20 = vsub.f32 1.0, %v472_v19 }
 0x17b   :  { %v474_v21 = vmul.f32 %v683_v6, %v473_v20 }
 0x17d   :  { %v475_v22 = vadd.f32 %v683_v6, %v474_v21 }
 0x17f   :  { %v479_v25 = vsel %vm478_vm7, %v683_v6, %v475_v22 }
 0x180   :  { %v484_v27 = vsel %vm481_vm8, %v483_v26, %v479_v25 }
 0x181   :  { %v489_v28 = vmul.f32 0.5, %v484_v27 }
 0x1ad   :  { %v493_v3 = vpop.permute.xlu2 %492 }
 0x1ae   :  { %v510_v5 = vadd.f32 %v493_v3, %v486_v54 }
 0x1b0   :  { %633 = vmatmul.msk.f32.vlgmr.msra.gmra.mxu2 %vm237_vm0, %v510_v5  ;;  %638 = vmatmul.msk.f32.vlgmr.msra.gmra.mxu3 %vm237_vm0, %v510_v5 }
 0x1b5   :  { %v498_v9 = vpop.permute.xlu2 %497 }
 0x1b6   :  { %v511_v13 = vadd.f32 %v498_v9, %v487_v61 }
 0x1b8   :  { %634 = vmatmul.msk.f32.gmra.mxu2 %vm237_vm0, %v511_v13  ;;  %639 = vmatmul.msk.f32.gmra.mxu3 %vm237_vm0, %v511_v13 }
 0x1bd   :  { %v503_v16 = vpop.permute.xlu2 %502 }
 0x1be   :  { %v512_v17 = vadd.f32 %v503_v16, %v488_v11 }
 0x1c0   :  { %635 = vmatmul.msk.f32.gmra.mxu2 %vm237_vm0, %v512_v17  ;;  %640 = vmatmul.msk.f32.gmra.mxu3 %vm237_vm0, %v512_v17 }
 0x1d6   :  { %v508_v40 = vpop.permute.xlu0 %507 }
 0x1d7   :  { %v513_v49 = vadd.f32 %v508_v40, %v489_v28 }
 0x1d9   :  { %636 = vmatmul.msk.f32.gmra.mxu2 %vm237_vm0, %v513_v49  ;;  %641 = vmatmul.msk.f32.gmra.mxu3 %vm237_vm0, %v513_v49 }
 0x233   :  { %v557_v29 = vpop.f32.mrf.mxu2  ;;  %v586_v30 = vpop.f32.mrf.mxu3 }
 0x234   :  { %v598_v31 = vmul.f32 %v557_v29, %v853_v32  ;;  %v599_v10 = vmul.f32 %v586_v30, %v858_v33 }
 0x236   :  { %606 = vst [vmem:[%s1075_s5] sm:$0xff] %v598_v31 }
 0x237   :  { %607 = vst [vmem:[%s1075_s5 + $0x8] sm:$0xff] %v599_v10 }
 0x23b   :  { %v560_v41 = vpop.f32.mrf.mxu2  ;;  %v589_v43 = vpop.f32.mrf.mxu3 }
 0x23c   :  { %v600_v46 = vmul.f32 %v560_v41, %v865_v34  ;;  %v601_v47 = vmul.f32 %v589_v43, %v870_v35 }
 0x23e   :  { %608 = vst [vmem:[%s1075_s5 + $0x10] sm:$0xff] %v600_v46 }
 0x23f   :  { %609 = vst [vmem:[%s1075_s5 + $0x18] sm:$0xff] %v601_v47 }
 0x243   :  { %v563_v32 = vpop.f32.mrf.mxu2  ;;  %v592_v33 = vpop.f32.mrf.mxu3 }
 0x244   :  { %v602_v48 = vmul.f32 %v563_v32, %v877_v36  ;;  %v603_v50 = vmul.f32 %v592_v33, %v882_v37 }
 0x246   :  { %610 = vst [vmem:[%s1075_s5 + $0x20] sm:$0xff] %v602_v48 }
 0x247   :  { %611 = vst [vmem:[%s1075_s5 + $0x28] sm:$0xff] %v603_v50 }
 0x25c   :  { %v566_v34 = vpop.f32.mrf.mxu2  ;;  %v595_v35 = vpop.f32.mrf.mxu3 }
 0x25d   :  { %v604_v51 = vmul.f32 %v566_v34, %v889_v38  ;;  %v605_v52 = vmul.f32 %v595_v35, %v894_v39 }
 0x25f   :  { %612 = vst [vmem:[%s1075_s5 + $0x30] sm:$0xff] %v604_v51 }
 0x260   :  { %613 = vst [vmem:[%s1075_s5 + $0x38] sm:$0xff] %v605_v52 }
 0x261   :  { %618 = vsyncpa [#allocation3], 1 }
 0x262   :  { %619 = vsyncpa [#allocation5], 1 }

</bundles_post_ra>
